<compile_context>
chip_gen: v5e
topology: v5e:2x2
jax: 0.10.0
libtpu: 0.0.40
codegen_flags: <defaults>
</compile_context>

<pallas_src>
import jax
import jax.numpy as jnp
from jax.experimental import pallas as pl
from jax.experimental.pallas import tpu as pltpu


def conv_bn_leaky_kernel(x_ref, w_ref, shift_ref, o_ref):
    # x_ref:     (1, C_in, TN)   pixels on lanes (dense)
    # w_ref:     (C_out, C_in)   BN scale already folded in
    # shift_ref: (C_out, 1)      broadcast over the lane (pixel) axis
    # NOTE: for tail tiles (HW % TN != 0) the out-of-bounds lanes hold garbage
    # that Pallas masks on store -- never add a cross-lane reduction here.
    x = x_ref[0]                                                  # (C_in, TN)
    acc = jnp.dot(w_ref[...], x, preferred_element_type=jnp.float32)
    y = acc + shift_ref[...]
    y = jnp.maximum(y, 0.1 * y)                                   # LeakyReLU(0.1)
    o_ref[0] = y.astype(o_ref.dtype)


def _round_up(v, m):
    return (v + m - 1) // m * m


def _vmem_limit_bytes():
    """Architecture-aware scoped-VMEM limit.

    v5e/v6e have 128 MiB physical VMEM -> use a generous limit so large
    channel counts still get big lane tiles.  v7x has 64 MiB per TensorCore ->
    stay at ~52 MiB and leave headroom for Mosaic-internal scratch.
    """
    phys = 64 * 1024 * 1024                        # conservative default (v7x)
    try:
        phys = int(pltpu.get_tpu_info().vmem_capacity_bytes)
    except Exception:
        pass
    if phys >= 128 * 1024 * 1024:
        return 100 * 1024 * 1024                   # v5e / v6e
    return 52 * 1024 * 1024                        # v7x


def _pick_lane_tile(hw, c_in, c_out, itemsize, n_batch, vmem_limit,
                    max_tn=32768):
    """Pick the lane (pixel) tile TN.

    As large as the VMEM budget allows (per-grid-step overhead ~0.35us and
    lane-dense, unmasked stores are the dominant levers for this memory-bound
    kernel), a multiple of 128 (or the full HW extent), and small enough that
    the double-buffered x/y blocks PLUS the weight and shift blocks (also
    double-buffered by default) fit under the scoped-VMEM limit with headroom.
    Sublane padding of the channel dims (to 8 rows for f32) is included.
    """
    c_in_p = _round_up(c_in, 8)
    c_out_p = _round_up(c_out, 8)
    # x + y pipeline blocks, 2 buffers each.
    bytes_per_lane = (c_in_p + c_out_p) * itemsize * 2
    # Constant-index weight / shift blocks (Pallas still allocates 2 buffers).
    w_bytes = c_out_p * _round_up(c_in, 128) * itemsize * 2
    s_bytes = c_out_p * 128 * 4 * 2
    budget = int(vmem_limit * 0.75) - w_bytes - s_bytes
    budget = max(budget, bytes_per_lane * 128)     # always allow one 128-lane tile
    tn = min(max_tn, budget // bytes_per_lane // 128 * 128)
    tn = max(tn, 128)
    if hw <= tn:
        tn = hw                    # full extent: always a legal block shape
    # Megacore: v7x has 2 TensorCores.  If N == 1 a single-tile grid would
    # leave one core idle -- split HW into >=2 lane-aligned tiles when possible.
    if n_batch == 1 and tn >= hw and hw >= 256:
        tn = max(128, _round_up(pl.cdiv(hw, 2), 128))
    return tn


def conv_bn_leaky_pallas(x3d, w_eff, shift):
    N, C_in, HW = x3d.shape
    C_out = w_eff.shape[0]
    vmem_limit = _vmem_limit_bytes()
    tn = _pick_lane_tile(HW, C_in, C_out, x3d.dtype.itemsize, N, vmem_limit)
    grid = (N, pl.cdiv(HW, tn))
    shift2d = shift.reshape(C_out, 1).astype(jnp.float32)
    return pl.pallas_call(
        conv_bn_leaky_kernel,
        out_shape=jax.ShapeDtypeStruct((N, C_out, HW), x3d.dtype),
        grid_spec=pltpu.PrefetchScalarGridSpec(
            num_scalar_prefetch=0,
            grid=grid,
            in_specs=[
                pl.BlockSpec((1, C_in, tn), lambda n, j: (n, 0, j)),
                # Constant index maps: fetched once, stay resident in VMEM.
                # TODO(synk): pipeline_mode=pl.Buffered(1) would halve their
                # footprint; the budget above conservatively assumes 2 buffers.
                pl.BlockSpec((C_out, C_in), lambda n, j: (0, 0)),
                pl.BlockSpec((C_out, 1), lambda n, j: (0, 0)),
            ],
            out_specs=pl.BlockSpec((1, C_out, tn), lambda n, j: (n, 0, j)),
        ),
        compiler_params=pltpu.CompilerParams(
            dimension_semantics=("parallel", "parallel"),
            vmem_limit_bytes=vmem_limit,
        ),
    )(x3d, w_eff, shift2d)


def upsample_forward(x_nchw, params):
    """Equivalent of upsample(in_ch, out_ch).forward (BatchNorm in eval mode)."""
    N, C_in, H, W = x_nchw.shape
    w = params["conv_w"]          # (C_in, C_out)  1x1 conv kernel, squeezed
    b = params["conv_b"]          # (C_out,)
    gamma, beta = params["bn_gamma"], params["bn_beta"]
    mean, var = params["bn_mean"], params["bn_var"]
    eps = 1e-5

    # Fold conv bias + inference BatchNorm into the weight and a per-channel shift.
    eff_scale = gamma / jnp.sqrt(var + eps)              # (C_out,)
    w_eff = (w * eff_scale[None, :]).T                   # (C_out, C_in), scale folded
    eff_shift = (b - mean) * eff_scale + beta            # (C_out,)

    # NCHW -> (N, C_in, H*W): pure reshape, pixels land on the lane axis.
    x3d = x_nchw.reshape(N, C_in, H * W)
    y3d = conv_bn_leaky_pallas(x3d, w_eff, eff_shift)

    C_out = w_eff.shape[0]
    y = y3d.reshape(N, C_out, H, W)

    # Nearest-neighbor 2x upsample (pure replication), still NCHW so no
    # transposes anywhere in the wrapper.
    # TODO(synk): fusing this replication into the kernel's output store would
    # cut HBM traffic from (C_in + 6*C_out) to (C_in + 4*C_out) bytes/pixel,
    # but with pixels on the lane axis it needs a lane-granularity element
    # interleave (jnp.repeat on the minor dim / stride-2 lane stores), which
    # does not lower reliably in Mosaic today; kept as one XLA broadcast copy.
    y6 = jnp.broadcast_to(y[:, :, :, None, :, None], (N, C_out, H, 2, W, 2))
    return y6.reshape(N, C_out, 2 * H, 2 * W)


def make_params(key, in_channels, out_channels, dtype=jnp.float32):
    k1, k2, k3, k4, k5, k6 = jax.random.split(key, 6)
    # nn.Conv2d(in, out, 1) weight shape (out, in, 1, 1) -> stored as (in, out)
    conv_w = 0.1 * jax.random.normal(k1, (in_channels, out_channels), dtype)
    conv_b = 0.1 * jax.random.normal(k2, (out_channels,), dtype)
    bn_gamma = 1.0 + 0.1 * jax.random.normal(k3, (out_channels,), dtype)
    bn_beta = 0.1 * jax.random.normal(k4, (out_channels,), dtype)
    bn_mean = 0.1 * jax.random.normal(k5, (out_channels,), dtype)
    bn_var = jnp.abs(1.0 + 0.1 * jax.random.normal(k6, (out_channels,), dtype))
    return dict(conv_w=conv_w, conv_b=conv_b, bn_gamma=bn_gamma,
                bn_beta=bn_beta, bn_mean=bn_mean, bn_var=bn_var)


def reference_forward(x_nchw, params):
    """Pure-JAX reference following the literal PyTorch math (no folding)."""
    eps = 1e-5
    w, b = params["conv_w"], params["conv_b"]
    x = jnp.transpose(x_nchw, (0, 2, 3, 1))                 # NHWC
    y = jnp.einsum("nhwc,cd->nhwd", x, w) + b               # 1x1 conv + bias
    y = (y - params["bn_mean"]) / jnp.sqrt(params["bn_var"] + eps)
    y = y * params["bn_gamma"] + params["bn_beta"]          # BatchNorm (eval)
    y = jnp.where(y > 0, y, 0.1 * y)                        # LeakyReLU(0.1)
    y = jnp.repeat(jnp.repeat(y, 2, axis=1), 2, axis=2)     # nearest 2x
    return jnp.transpose(y, (0, 3, 1, 2))                   # back to NCHW


if __name__ == "__main__":
    key = jax.random.PRNGKey(0)
    kx, kp = jax.random.split(key)

    N, C_in, H, W = 2, 4, 16, 16
    C_out = 8
    x = jax.random.normal(kx, (N, C_in, H, W), jnp.float32)
    params = make_params(kp, C_in, C_out)

    out = upsample_forward(x, params)
    out = jax.block_until_ready(out)

    ref = reference_forward(x, params)
    assert out.shape == (N, C_out, 2 * H, 2 * W), out.shape
    assert jnp.allclose(out, ref, atol=1e-4, rtol=1e-4)

    print("KERNEL_OK")
</pallas_src>

<mosaic_0001>
module attributes {stable_mosaic.version = 11 : i64} {
  func.func @conv_bn_leaky_kernel(%arg0: i32, %arg1: i32, %arg2: memref<1x4x256xf32, #tpu.memory_space<vmem>>, %arg3: memref<8x4xf32, #tpu.memory_space<vmem>>, %arg4: memref<8x1xf32, #tpu.memory_space<vmem>>, %arg5: memref<1x8x256xf32, #tpu.memory_space<vmem>>) attributes {dimension_semantics = [#tpu.dimension_semantics<parallel>, #tpu.dimension_semantics<parallel>], iteration_bounds = array<i64: 2, 1>, scalar_prefetch = 0 : i64, scratch_operands = 0 : i64, tpu.core_type = #tpu.core_type<tc>, window_params = [{transform_indices = @transform_0, window_bounds = array<i64: 1, 4, 256>}, {pipeline_mode = #tpu.pipeline_mode<synchronous>, transform_indices = @transform_1, window_bounds = array<i64: 8, 4>}, {pipeline_mode = #tpu.pipeline_mode<synchronous>, transform_indices = @transform_2, window_bounds = array<i64: 8, 1>}, {transform_indices = @transform_3, window_bounds = array<i64: 1, 8, 256>}]} {
    %c0 = arith.constant 0 : index
    %c0_0 = arith.constant 0 : index
    %c0_1 = arith.constant 0 : index
    %0 = vector.load %arg2[%c0, %c0_0, %c0_1] : memref<1x4x256xf32, #tpu.memory_space<vmem>>, vector<1x4x256xf32>
    %1 = vector.shape_cast %0 : vector<1x4x256xf32> to vector<4x256xf32>
    %c0_2 = arith.constant 0 : index
    %c0_3 = arith.constant 0 : index
    %2 = vector.load %arg3[%c0_2, %c0_3] : memref<8x4xf32, #tpu.memory_space<vmem>>, vector<8x4xf32>
    %cst = arith.constant dense<0.000000e+00> : vector<8x256xf32>
    %3 = tpu.matmul %2, %1, %cst {dimension_numbers = #tpu.dot_dimension_numbers<[1], [0], [0], [1], [0, 0, 1, 1], [], []>} : vector<8x4xf32>, vector<4x256xf32>, vector<8x256xf32> -> vector<8x256xf32>
    %c0_4 = arith.constant 0 : index
    %c0_5 = arith.constant 0 : index
    %4 = vector.load %arg4[%c0_4, %c0_5] : memref<8x1xf32, #tpu.memory_space<vmem>>, vector<8x1xf32>
    %5 = vector.broadcast %4 : vector<8x1xf32> to vector<8x256xf32>
    %6 = arith.addf %3, %5 : vector<8x256xf32>
    %cst_6 = arith.constant 1.000000e-01 : f32
    %7 = vector.broadcast %cst_6 : f32 to vector<8x256xf32>
    %8 = arith.mulf %7, %6 : vector<8x256xf32>
    %9 = arith.maximumf %6, %8 : vector<8x256xf32>
    %c0_7 = arith.constant 0 : index
    %c0_8 = arith.constant 0 : index
    %c0_9 = arith.constant 0 : index
    %10 = vector.load %arg5[%c0_7, %c0_8, %c0_9] : memref<1x8x256xf32, #tpu.memory_space<vmem>>, vector<1x8x256xf32>
    %11 = vector.shape_cast %10 : vector<1x8x256xf32> to vector<8x256xf32>
    %12 = vector.shape_cast %9 : vector<8x256xf32> to vector<1x8x256xf32>
    tpu.vector_store %arg5[%c0_7, %c0_8, %c0_9], %12 {strides = array<i32>} : memref<1x8x256xf32, #tpu.memory_space<vmem>>, vector<1x8x256xf32>,
    return
  }
  func.func @transform_0(%arg0: i32, %arg1: i32) -> (i32, i32, i32) {
    %c0_i32 = arith.constant 0 : i32
    %c0_i32_0 = arith.constant 0 : i32
    return %arg0, %c0_i32, %arg1 : i32, i32, i32
  }
  func.func @transform_1(%arg0: i32, %arg1: i32) -> (i32, i32) {
    %c0_i32 = arith.constant 0 : i32
    %c0_i32_0 = arith.constant 0 : i32
    %c0_i32_1 = arith.constant 0 : i32
    return %c0_i32, %c0_i32_0 : i32, i32
  }
  func.func @transform_2(%arg0: i32, %arg1: i32) -> (i32, i32) {
    %c0_i32 = arith.constant 0 : i32
    %c0_i32_0 = arith.constant 0 : i32
    %c0_i32_1 = arith.constant 0 : i32
    return %c0_i32, %c0_i32_0 : i32, i32
  }
  func.func @transform_3(%arg0: i32, %arg1: i32) -> (i32, i32, i32) {
    %c0_i32 = arith.constant 0 : i32
    %c0_i32_0 = arith.constant 0 : i32
    return %arg0, %c0_i32, %arg1 : i32, i32, i32
  }
}

</mosaic_0001>

<bundles_post_ra>
// kernel: tpu_custom_call.1
= control target key start
LH: loop header
LB: loop body
LE: loop exit
PB: predicated region body
PF: predicated region fallthrough
CT: control target
= control target key end

     0   :  { %8 = vsyncpa [#allocation3], 0  ;;  %s642_s0 = inlined_call_operand.vmem [shape: f32[2,4,256], index: 0, kind: input, shape index: {}]   ;;  %s643_s1 = inlined_call_operand.vmem [shape: f32[8,4], index: 1, kind: input, shape index: {}]   ;;  %s644_s2 = inlined_call_operand.vmem [shape: f32[8,1], index: 2, kind: input, shape index: {}]   ;;  %s645_s3 = inlined_call_operand.hbm [shape: f32[2,8,256], index: 3, kind: output, shape index: {}]  }
   0x1   :  { %10 = vsyncpa [#allocation3 + $0x1], 0  ;;  %s539_s12 = smov 0   ;;  %s541_s13 = smov 0  }
   0x2   :  { %s543_s14 = smov 0   ;;  %s545_s15 = smov 0  }
   0x3   :  { %s547_s16 = smov 0   ;;  %s549_s17 = smov 0  }
   0x4 LB: > { %s362_s18 = sadd.s32 4294967295, %s516_s17   ;;  %s363_s19 = sadd.s32 4294967294, %s516_s17   ;;  %s516_s17 = sphi %s549_s17, %s16_s17   ;;  %s512_s16 = sphi %s547_s16, %s652_s16   ;;  %s508_s15 = sphi %s545_s15, %s651_s15   ;;  %s504_s14 = sphi %s543_s14, %s650_s14   ;;  %s500_s13 = sphi %s541_s13, %s649_s13   ;;  %s496_s12 = sphi %s539_s12, %s648_s12  }
   0x5   : > { %s28_s20 = sadd.s32 1, %s512_s16  ;;  %s107_s21 = sadd.s32 1, %s504_s14 }
   0x6   : > { %p30_p0 = scmp.ge.s32.totalorder %s28_s20, 2  ;;  %p117_p1 = scmp.ne.s32.totalorder %s504_s14, %s500_s13 }
   0x7   : > { %p118_p2 = scmp.eq.s32.totalorder %s362_s18, 1  ;;  %p123_p3 = scmp.ne.s32.totalorder %s500_s13, %s496_s12 }
   0x8   : > { %s654_s20 = smov (%p30_p0, %s28_s20), 0  ;;  %p124_p5 = scmp.eq.s32.totalorder %s363_s19, 1 }
   0x9   : > { %p579_p4 = por %p118_p2, %p117_p1  ;;  %s102_s23 = ssub.s32 %s512_s16, %s654_s20 }
   0xa   : > { %p366_p6 = scmp.ge.s32.totalorder %s516_s17, 1  ;;  %p105_p7 = scmp.eq.s32.totalorder %s102_s23, 0 }
   0xb   : > { %p586_p8 = por %p124_p5, %p123_p3  ;;  %p161_p9 = scmp.lt.s32.totalorder %s516_s17, 3 }
   0xc   : > { %s592_s25 = scalar_select %p105_p7, %s504_s14, %s107_s21  }
   0xd   : > { %p162_p10 = pnand %p366_p6, %p161_p9 }
   0xe   : > { %p190_p11 = scmp.lt.s32.totalorder (!%p162_p10), %s508_s15, 1  ;;  %s186_s8 = sand.u32 (!%p162_p10), 1, %s500_s13  }
   0xf   : > { %165 = sbr.rel (%p162_p10) target bundleno = 170 (0xaa), region = 32  ;;  %s367_s9 = sshll.u32 (!%p162_p10), %s186_s8, 4 }
  0x10   : > { %s380_s10 = sshll.u32 (!%p162_p10), %s508_s15, 4  ;;  %s188_s21 = scalar_lea.vmem (!%p162_p10), [#allocation2], %s367_s9 }
  0x11   : > { %s281_s19 = scalar_lea.hbm (!%p162_p10), %s645_s3, %s380_s10  ;;  %s283_s23 = sshll.u32 (!%p162_p10), %s188_s21, 4  ;;  %s284_s23 = int_to_ptr.vmem [resolvable:$true] %s283_s23 }
  0x12   : > { %s285_s26 = sshll.u32 (!%p162_p10), %s281_s19, 4  ;;  %s458_s4 = scalar_lea.hbm (!%p162_p10), %s645_s3, 32  ;;  %s286_s26 = int_to_ptr.hbm [resolvable:$true] %s285_s26 }
  0x13   : > { %s452_s27 = sshra.s32 (!%p162_p10), %s286_s26, 4  ;;  %s453_s27 = int_to_ptr.hbm [resolvable:$true] %s452_s27 }
  0x14   : > { %v202_v0 = vld [vmem:[%s644_s2] sm:$0xff]  ;;  %v518_v1 = vmov 0   ;;  %s191_s28 = scalar_select %p190_p11, %s508_s15, 1  ;;  %vm216_vm0 = vcmask 1043456   ;;  %vm212_vm1 = vcmask 31744  }
  0x15   : > { %437 = vset.pattern.permute.xlu0 %v518_v1  ;;  %v201_v3 = vld [vmem:[%s643_s1] sm:$0xff]  ;;  %s268_s15 = scalar_lea.sflag [#allocation3], %s186_s8  ;;  %p459_p1 = scmp.lt.s32.totalorder %s453_s27, %s645_s3 }
  0x16   : > { %205 = vperm.xlu0 %437, %v202_v0   ;;  %s379_s29 = sshll.u32 %s191_s28, 3  ;;  %s454_s28 = scalar_lea.hbm %s453_s27, 16 }
  0x17   : > { %s197_s5 = scalar_lea.vmem %s642_s0, %s379_s29  ;;  %p455_p12 = scmp.ne.s32.totalorder %s453_s27, %s454_s28 }
  0x18   : > { %v200_v2 = vld [vmem:[%s197_s5] sm:$0xff]  ;;  %p460_p2 = scmp.lt.s32.totalorder %s458_s4, %s454_s28 }
  0x19   : > { %209 = vst [vmem:[#allocation1] ss:$2 sm:$0xff] %v200_v2  ;;  %p456_p13 = pnand %p455_p12, %p579_p4 }
  0x1a   : > { %p461_p3 = por %p460_p2, %p459_p1 }
  0x1b   : > { %p457_p0 = pneg %p456_p13 }
  0x1d   : > { %p462_p5 = pnand %p461_p3, %p457_p0 }
  0x20   : > { %v210_v4 = vld.sshfl [vmem:[#allocation1] sm:$0xff pattern:$0x75316420]  ;;  %v211_v5 = vld.sshfl [vmem:[#allocation1 + $0x8] sm:$0xff pattern:$0x75316420] }
  0x21   : > { %370 = vmatpush.msk.msra.mxu0 %vm216_vm0, %v210_v4  ;;  %372 = vmatpush.msk.msra.mxu1 %vm216_vm0, %v211_v5 }
  0x22   : > { %371 = vmatmul.msk.f32.vlgmr.msra.gmra.mxu0 %vm212_vm1, %v201_v3  ;;  %373 = vmatmul.msk.f32.vlgmr.msra.gmra.mxu1 %vm212_vm1, %v201_v3 }
  0x88   : > { %v206_v6 = vpop.permute.xlu0 %205 }
  0x9f   : > { %v238_v7 = vpop.f32.mrf.mxu0  ;;  %v258_v8 = vpop.f32.mrf.mxu1 }
  0xa0   : > { %v239_v9 = vadd.f32 %v238_v7, %v206_v6  ;;  %v259_v10 = vadd.f32 %v258_v8, %v206_v6 }
  0xa2   : > { %v261_v11 = vmul.f32 0.1, %v239_v9  ;;  %v262_v12 = vmul.f32 0.1, %v259_v10 }
  0xa4   : > { %v263_v13 = vmax.f32 %v239_v9, %v261_v11  ;;  %v264_v14 = vmax.f32 %v259_v10, %v262_v12 }
  0xa6   : > { %265 = vst [vmem:[%s188_s21] sm:$0xff] %v263_v13 }
  0xa7   : > { %266 = vst [vmem:[%s188_s21 + $0x8] sm:$0xff] %v264_v14 }
  0xa8   : > { %465 = shalt.err (!%p462_p5)
}
  0xa9   : > { %381 = dma.vmem_to_hbm [thread:$0]  (%p579_p4), %s284_s23, 256, %s286_s26, %s268_s15  }
  0xaa PF: > { %p387_p6 = scmp.ge.s32.totalorder %s516_s17, 2  ;;  %s297_s7 = sand.u32 1, %s496_s12  }
  0xab   : > { %s298_s8 = scalar_lea.sflag [#allocation3], %s297_s7 }
  0xac   : > { %p384_p7 = pnand %p387_p6, %p586_p8 }
  0xae   : > { %p385_p9 = pneg %p384_p7 }
  0xb0   : > { %491 = dma.done.wait (%p385_p9), %s298_s8, 256  }
  0xb1   : > { %493 = vsyncadd (%p385_p9), %s298_s8, 4294967040  ;;  %s16_s17 = sadd.s32 1, %s516_s17   ;;  %s648_s12 = smov %s500_s13 }
  0xb2   : > { %p13_p10 = scmp.ge.s32.totalorder %s16_s17, 4   ;;  %s649_s13 = smov %s504_s14 }
  0xb3   : > { %s650_s14 = smov %s592_s25  ;;  %s651_s15 = smov %s512_s16 }
  0xb4   : > { %s652_s16 = smov %s654_s20  ;;  %15 = sbr.rel (!%p13_p10) target bundleno = 4 (0x4), region = 67 }
  0xb9   :  { %304 = vsyncpa [#allocation3], 1 }
  0xba   :  { %306 = vsyncpa [#allocation3 + $0x1], 1 }

</bundles_post_ra>
